<compile_context>
chip_gen: v6e
topology: v6e:2x2x1
jax: 0.10.0
libtpu: 0.0.40
codegen_flags: <defaults>
</compile_context>

<pallas_src>
import functools

import jax
import jax.numpy as jnp
from jax.experimental import pallas as pl
from jax.experimental.pallas import tpu as pltpu


def _make_kernel(D, use_slice_stores):
    if use_slice_stores:
        # D % 128 == 0: every quarter starts on a lane-aligned boundary, so
        # these are unmasked full-width vector stores.
        def kernel(p_ref, h_ref, o_ref):
            p = p_ref[...]
            h = h_ref[...]
            o_ref[:, 0:D] = p
            o_ref[:, D:2 * D] = p * h
            o_ref[:, 2 * D:3 * D] = p - h
            o_ref[:, 3 * D:4 * D] = h
    else:
        # D not lane-aligned: assemble the (tile_b, 4*D) tile in vregs and do
        # one lane-dense store instead of four misaligned/masked slice stores.
        def kernel(p_ref, h_ref, o_ref):
            p = p_ref[...]
            h = h_ref[...]
            o_ref[...] = jnp.concatenate([p, p * h, p - h, h], axis=-1)
    return kernel


def _pick_tile_b(B, D, dtype, vmem_budget_bytes=8 << 20):
    """Largest batch tile keeping double-buffered VMEM residency under budget."""
    itemsize = jnp.dtype(dtype).itemsize
    # Sublane packing: 8 rows for 32-bit, 16 for 16-bit, 32 for 8-bit.
    sub = 8 * max(1, 4 // itemsize)
    # Double-buffered residency per row: 2 * (D + D + 4*D) * itemsize.
    bytes_per_row = 12 * D * itemsize
    max_rows = max(sub, vmem_budget_bytes // max(1, bytes_per_row))
    max_rows = min(max_rows, 1024)
    if B <= max_rows:
        # Whole batch in one tile; block dim == full array dim is always a
        # legal TPU block shape regardless of the (8,128) rule.
        return B
    # Tile smaller than B: keep it a multiple of the sublane packing.
    tile_b = (max_rows // sub) * sub
    return max(sub, tile_b)


@functools.partial(jax.jit, static_argnames=())
def premises_hypotheses_embedding(premises, hypotheses):
    assert premises.shape == hypotheses.shape
    assert premises.dtype == hypotheses.dtype
    B, D = premises.shape
    out_shape = jax.ShapeDtypeStruct((B, 4 * D), premises.dtype)

    tile_b = _pick_tile_b(B, D, premises.dtype)
    grid = (pl.cdiv(B, tile_b),)

    kernel = _make_kernel(D, use_slice_stores=(D % 128 == 0))

    return pl.pallas_call(
        kernel,
        out_shape=out_shape,
        grid=grid,
        in_specs=[
            pl.BlockSpec((tile_b, D), lambda i: (i, 0)),
            pl.BlockSpec((tile_b, D), lambda i: (i, 0)),
        ],
        out_specs=pl.BlockSpec((tile_b, 4 * D), lambda i: (i, 0)),
        compiler_params=pltpu.CompilerParams(
            dimension_semantics=("parallel",),
        ),
    )(premises, hypotheses)


if __name__ == "__main__":
    key = jax.random.PRNGKey(0)
    kp, kh = jax.random.split(key)

    B, D = 2, 32  # small shapes: batch=2, hidden=32
    premises = jax.random.normal(kp, (B, D), dtype=jnp.float32)
    hypotheses = jax.random.normal(kh, (B, D), dtype=jnp.float32)

    out = premises_hypotheses_embedding(premises, hypotheses)
    out = jax.block_until_ready(out)

    # Reference check in plain JAX (mirrors the PyTorch forward).
    ref = jnp.concatenate(
        [premises, premises * hypotheses, premises - hypotheses, hypotheses],
        axis=1,
    )
    assert out.shape == (B, 4 * D), out.shape
    assert jnp.allclose(out, ref, atol=1e-6), "mismatch vs reference"

    print("KERNEL_OK")
</pallas_src>

<mosaic_0001>
module attributes {stable_mosaic.version = 11 : i64} {
  func.func @kernel(%arg0: i32, %arg1: memref<2x32xf32, #tpu.memory_space<vmem>>, %arg2: memref<2x32xf32, #tpu.memory_space<vmem>>, %arg3: memref<2x128xf32, #tpu.memory_space<vmem>>) attributes {dimension_semantics = [#tpu.dimension_semantics<parallel>], iteration_bounds = array<i64: 1>, scalar_prefetch = 0 : i64, scratch_operands = 0 : i64, tpu.core_type = #tpu.core_type<tc>, window_params = [{transform_indices = @transform_0, window_bounds = array<i64: 2, 32>}, {transform_indices = @transform_1, window_bounds = array<i64: 2, 32>}, {transform_indices = @transform_2, window_bounds = array<i64: 2, 128>}]} {
    %c0 = arith.constant 0 : index
    %c0_0 = arith.constant 0 : index
    %0 = vector.load %arg1[%c0, %c0_0] : memref<2x32xf32, #tpu.memory_space<vmem>>, vector<2x32xf32>
    %c0_1 = arith.constant 0 : index
    %c0_2 = arith.constant 0 : index
    %1 = vector.load %arg2[%c0_1, %c0_2] : memref<2x32xf32, #tpu.memory_space<vmem>>, vector<2x32xf32>
    %2 = arith.mulf %0, %1 : vector<2x32xf32>
    %3 = arith.subf %0, %1 : vector<2x32xf32>
    %4 = tpu.concatenate %0, %2, %3, %1 in 1 : vector<2x32xf32>, vector<2x32xf32>, vector<2x32xf32>, vector<2x32xf32> -> vector<2x128xf32>
    %c0_3 = arith.constant 0 : index
    %c0_4 = arith.constant 0 : index
    %5 = vector.load %arg3[%c0_3, %c0_4] : memref<2x128xf32, #tpu.memory_space<vmem>>, vector<2x128xf32>
    tpu.vector_store %arg3[%c0_3, %c0_4], %4 {strides = array<i32>} : memref<2x128xf32, #tpu.memory_space<vmem>>, vector<2x128xf32>,
    return
  }
  func.func @transform_0(%arg0: i32) -> (i32, i32) {
    %c0_i32 = arith.constant 0 : i32
    %c0_i32_0 = arith.constant 0 : i32
    return %arg0, %c0_i32 : i32, i32
  }
  func.func @transform_1(%arg0: i32) -> (i32, i32) {
    %c0_i32 = arith.constant 0 : i32
    %c0_i32_0 = arith.constant 0 : i32
    return %arg0, %c0_i32 : i32, i32
  }
  func.func @transform_2(%arg0: i32) -> (i32, i32) {
    %c0_i32 = arith.constant 0 : i32
    %c0_i32_0 = arith.constant 0 : i32
    return %arg0, %c0_i32 : i32, i32
  }
}

</mosaic_0001>

<bundles_post_ra>
// kernel: premises_hypotheses_embedding.1
= control target key start
LH: loop header
LB: loop body
LE: loop exit
PB: predicated region body
PF: predicated region fallthrough
CT: control target
= control target key end

     0   :  { %7 = vsyncpa [#allocation3], 0  ;;  %s177_s0 = inlined_call_operand.hbm [shape: f32[2,32], index: 0, kind: input, shape index: {}]   ;;  %s178_s1 = inlined_call_operand.hbm [shape: f32[2,32], index: 1, kind: input, shape index: {}]   ;;  %s179_s2 = inlined_call_operand.hbm [shape: f32[2,128], index: 2, kind: output, shape index: {}]  }
   0x1   :  { %8 = vsyncpa [#allocation6], 0 }
   0x2   :  { %9 = vsyncpa [#allocation4], 0  ;;  %s147_s9 = smov [#allocation2]   ;;  %s148_s11 = smov [#allocation5]  }
   0x3   :  { %s16_s10 = sshll.u32 %s147_s9, 4  ;;  %s26_s12 = sshll.u32 %s148_s11, 4  ;;  %s17_s10 = int_to_ptr.vmem [resolvable:$true] %s16_s10  ;;  %s27_s12 = int_to_ptr.vmem [resolvable:$true] %s26_s12 }
   0x4   :  { %s89_s13 = scalar_lea.vmem %s17_s10, 32  ;;  %p94_p1 = scmp.lt.s32.totalorder %s17_s10, %s17_s10 }
   0x5   :  { %p90_p0 = scmp.ne.s32.totalorder %s17_s10, %s89_s13  ;;  %p95_p2 = scmp.lt.s32.totalorder %s89_s13, %s89_s13 }
   0x7   :  { %p96_p3 = por %p95_p2, %p94_p1 }
   0x9   :  { %p97_p4 = pnand %p96_p3, %p90_p0 }
   0xb   :  { %100 = shalt.err (!%p97_p4)
}
   0xc   :  { %19 = dma.hbm_to_vmem [thread:$0]  %s177_s0, 32, %s17_s10, [#allocation3]  }
   0xd   :  { %s109_s16 = scalar_lea.vmem %s27_s12, 32  ;;  %p114_p6 = scmp.lt.s32.totalorder %s27_s12, %s27_s12 }
   0xe   :  { %p110_p5 = scmp.ne.s32.totalorder %s27_s12, %s109_s16  ;;  %p115_p7 = scmp.lt.s32.totalorder %s109_s16, %s109_s16 }
  0x10   :  { %p116_p8 = por %p115_p7, %p114_p6 }
  0x12   :  { %p117_p9 = pnand %p116_p8, %p110_p5 }
  0x14   :  { %120 = shalt.err (!%p117_p9)
}
  0x15   :  { %29 = dma.hbm_to_vmem [thread:$0]  %s178_s1, 32, %s27_s12, [#allocation6]  }
  0x16   :  { %141 = dma.done.wait [#allocation3], 32  }
  0x17   :  { %142 = vsyncadd [#allocation3], 4294967264 }
  0x18   :  { %143 = dma.done.wait [#allocation6], 32  }
  0x19   :  { %144 = vsyncadd [#allocation6], 4294967264  ;;  %v36_v0 = vld [vmem:[#allocation2] sm:$0x3]  ;;  %v37_v1 = vld [vmem:[#allocation5] sm:$0x3] }
  0x1a   :  { %v38_v2 = vmul.f32 %v37_v1, %v36_v0  ;;  %s149_s19 = smov 96   ;;  %s150_s0 = smov 32   ;;  %v39_v3 = vsub.f32 %v36_v0, %v37_v1  ;;  %vm52_vm0 = vcmask 261120   ;;  %vm54_vm1 = vcmask 523264  }
  0x1b   :  { %49 = vrot.lane.b32.xlu1 %v37_v1, %s149_s19  ;;  %s151_s20 = smov 64   ;;  %s152_s21 = smov [#allocation7]   ;;  %vm56_vm2 = vcmask 785408  }
  0x1c   :  { %41 = vrot.lane.b32.xlu0 %v38_v2, %s150_s0  ;;  %s65_s22 = sshll.u32 %s152_s21, 4  ;;  %s66_s22 = int_to_ptr.vmem [resolvable:$true] %s65_s22 }
  0x1d   :  { %s121_s1 = scalar_lea.vmem %s66_s22, 32  ;;  %p126_p11 = scmp.lt.s32.totalorder %s66_s22, %s66_s22 }
  0x1e   :  { %p122_p10 = scmp.ne.s32.totalorder %s66_s22, %s121_s1  ;;  %p127_p12 = scmp.lt.s32.totalorder %s121_s1, %s121_s1 }
  0x20   :  { %45 = vrot.lane.b32.xlu0 %v39_v3, %s151_s20  ;;  %p128_p13 = por %p127_p12, %p126_p11 }
  0x22   :  { %p129_p0 = pnand %p128_p13, %p122_p10 }
  0x8d   :  { %v50_v5 = vpop.permute.xlu1 %49 }
  0x8e   :  { %v42_v4 = vpop.permute.xlu0 %41 }
  0x8f   :  { %v53_v6 = vsel %vm52_vm0, %v36_v0, %v42_v4 }
  0x92   :  { %v46_v7 = vpop.permute.xlu0 %45 }
  0x93   :  { %v55_v8 = vsel %vm54_vm1, %v53_v6, %v46_v7 }
  0x94   :  { %v57_v9 = vsel %vm56_vm2, %v55_v8, %v50_v5 }
  0x95   :  { %58 = vst [vmem:[#allocation7] sm:$0x3] %v57_v9 }
  0x96   :  { %132 = shalt.err (!%p129_p0)
}
  0x97   :  { %68 = dma.vmem_to_hbm [thread:$0]  %s66_s22, 32, %s179_s2, [#allocation4]  }
  0x98   :  { %145 = dma.done.wait [#allocation4], 32  }
  0x99   :  { %146 = vsyncadd [#allocation4], 4294967264 }
  0x9a   :  { %72 = vsyncpa [#allocation3], 1 }
  0x9b   :  { %73 = vsyncpa [#allocation6], 1 }
  0x9c   :  { %74 = vsyncpa [#allocation4], 1 }

</bundles_post_ra>
